<compile_context>
chip_gen: v7x
topology: tpu7x:2x2x1
jax: 0.10.0
libtpu: 0.0.40
codegen_flags: <defaults>
</compile_context>

<pallas_src>
import math
import functools

import jax
import jax.numpy as jnp
import numpy as np
from jax.experimental import pallas as pl
from jax.experimental.pallas import tpu as pltpu


# ----------------------------------------------------------------------------
# Fused encoder-head kernel (single pallas_call, everything resident in VMEM)
# ----------------------------------------------------------------------------
def _make_encoder_kernel(*, B, Sv, St, E, H, Hp, D):
    f32, bf16 = jnp.float32, jnp.bfloat16

    def kernel(vit_ref, gpt_ref,
               w_ab_ref, b_ab_ref, w_c_ref, b_c_ref,
               w_it_ref, b_it_ref,
               w_q_ref, b_q_ref, w_kv_ref, b_kv_ref,
               w_p_ref, b_p_ref,
               t_ref, feat_ref, h_ref):
        v_all = vit_ref[...]                         # [B, Sv, E] f32
        g_all = gpt_ref[...]                         # [B, St, E] f32

        # ------------------- token path -------------------
        xv = v_all.reshape(B * Sv, E).astype(bf16)
        xg = g_all.reshape(B * St, E).astype(bf16)

        # relu(affine_a(ViTs)) / relu(affine_b(GPTs)); N padded to Hp lanes.
        hv = jnp.maximum(
            jnp.dot(xv, w_ab_ref[0], preferred_element_type=f32)
            + b_ab_ref[0:1, :], 0.0)                 # [B*Sv, Hp]
        hg = jnp.maximum(
            jnp.dot(xg, w_ab_ref[1], preferred_element_type=f32)
            + b_ab_ref[1:2, :], 0.0)                 # [B*St, Hp]

        h_ref[:, :Sv, :] = hv.reshape(B, Sv, Hp)
        h_ref[:, Sv:, :] = hg.reshape(B, St, Hp)

        # relu(affine_c(.)) — padded rows of w_c are zero, so padding is inert.
        wc = w_c_ref[...]
        bc = b_c_ref[...]
        tv = jnp.maximum(
            jnp.dot(hv.astype(bf16), wc, preferred_element_type=f32) + bc, 0.0)
        tg = jnp.maximum(
            jnp.dot(hg.astype(bf16), wc, preferred_element_type=f32) + bc, 0.0)
        t_ref[:, :Sv, :] = tv.reshape(B, Sv, E)
        t_ref[:, Sv:, :] = tg.reshape(B, St, E)

        # ------------------- CLS path -------------------
        img_cls = v_all[:, 0:1, :].reshape(B, E)     # [B, E]
        txt_cls = g_all[:, 0:1, :].reshape(B, E)     # [B, E]

        # F.normalize(img_cls, dim=-1): x / max(||x||, 1e-12)
        ss = jnp.sum(img_cls * img_cls, axis=-1, keepdims=True)
        img_n = img_cls * jax.lax.rsqrt(jnp.maximum(ss, 1e-24))

        img_feat = (jnp.dot(img_n.astype(bf16), w_it_ref[0],
                            preferred_element_type=f32) + b_it_ref[0:1, :])
        txt_feat = (jnp.dot(txt_cls.astype(bf16), w_it_ref[1],
                            preferred_element_type=f32) + b_it_ref[1:2, :])

        # Single-head nn.MultiheadAttention on 2-D (unbatched) CLS features.
        # Scale 1/sqrt(H) already folded into w_q / b_q at prep time.
        q = (jnp.dot(txt_feat.astype(bf16), w_q_ref[...],
                     preferred_element_type=f32) + b_q_ref[...])      # [B, H]
        kv = (jnp.dot(img_feat.astype(bf16), w_kv_ref[...],
                      preferred_element_type=f32) + b_kv_ref[...])    # [B, 2H]
        k = kv[:, :H]
        v = kv[:, H:]

        s = jax.lax.dot_general(q, k, (((1,), (1,)), ((), ())),
                                preferred_element_type=f32)           # [B, B]
        s = s - jnp.max(s, axis=-1, keepdims=True)
        p = jnp.exp(s)
        p = p * pl.reciprocal(jnp.sum(p, axis=-1, keepdims=True), approx=True)
        attn = jnp.dot(p, v, preferred_element_type=f32)              # [B, H]

        # projection([text_feat | aligned]) with out_proj folded into w_p[1]
        # and its bias folded into b_p (no materialized concat / aligned).
        feat = (jnp.dot(txt_feat.astype(bf16), w_p_ref[0],
                        preferred_element_type=f32)
                + jnp.dot(attn.astype(bf16), w_p_ref[1],
                          preferred_element_type=f32)
                + b_p_ref[...])
        feat_ref[...] = jnp.maximum(feat, 0.0).astype(feat_ref.dtype)

    return kernel


# ----------------------------------------------------------------------------
# One-time parameter prep: transpose to [K, N], pad hidden to 128 lanes,
# pack/fold, cast weights to bf16 (biases stay f32).
# ----------------------------------------------------------------------------
def prepare_params(p, *, hidden, embed, d_model):
    H, E, D = hidden, embed, d_model
    Hp = ((H + 127) // 128) * 128
    scale = 1.0 / math.sqrt(H)
    bf16, f32 = jnp.bfloat16, jnp.float32
    hp = functools.partial(jnp.matmul, precision=jax.lax.Precision.HIGHEST)

    def t_pad_cols(w, n_pad):                 # torch [out, in] -> [in, n_pad]
        wt = jnp.transpose(w)
        return jnp.pad(wt, ((0, 0), (0, n_pad - wt.shape[1])))

    def pad_vec(b, n_pad):
        return jnp.pad(b, (0, n_pad - b.shape[0]))

    w_ab = jnp.stack([t_pad_cols(p["affine_a_w"], Hp),
                      t_pad_cols(p["affine_b_w"], Hp)]).astype(bf16)   # [2,E,Hp]
    b_ab = jnp.stack([pad_vec(p["affine_a_b"], Hp),
                      pad_vec(p["affine_b_b"], Hp)]).astype(f32)       # [2,Hp]

    w_c = jnp.pad(jnp.transpose(p["affine_c_w"]),
                  ((0, Hp - H), (0, 0))).astype(bf16)                  # [Hp,E]
    b_c = p["affine_c_b"].reshape(1, E).astype(f32)

    w_it = jnp.stack([jnp.transpose(p["image_fc_w"]),
                      jnp.transpose(p["text_fc_w"])]).astype(bf16)     # [2,E,H]
    b_it = jnp.stack([p["image_fc_b"], p["text_fc_b"]]).astype(f32)    # [2,H]

    # Q projection with the 1/sqrt(H) attention scale folded in.
    w_q = (jnp.transpose(p["mha_q_w"]) * scale).astype(bf16)           # [H,H]
    b_q = (p["mha_q_b"] * scale).reshape(1, H).astype(f32)

    # K|V packed into a single lane-dense [H, 2H] matmul.
    w_kv = jnp.concatenate([jnp.transpose(p["mha_k_w"]),
                            jnp.transpose(p["mha_v_w"])],
                           axis=1).astype(bf16)                        # [H,2H]
    b_kv = jnp.concatenate([p["mha_k_b"],
                            p["mha_v_b"]]).reshape(1, 2 * H).astype(f32)

    # MHA out_proj folded into the "aligned" half of the projection (f32 fold).
    w_p_t = jnp.transpose(p["proj_w"])                                 # [2H,D]
    w_p0 = w_p_t[:H]                                                   # [H,D]
    w_p1 = w_p_t[H:]                                                   # [H,D]
    w_op = hp(jnp.transpose(p["mha_o_w"]), w_p1)                       # [H,D]
    w_p = jnp.stack([w_p0, w_op]).astype(bf16)                         # [2,H,D]
    b_p = (p["proj_b"] + hp(p["mha_o_b"], w_p1)).reshape(1, D).astype(f32)

    return dict(w_ab=w_ab, b_ab=b_ab, w_c=w_c, b_c=b_c,
                w_it=w_it, b_it=b_it,
                w_q=w_q, b_q=b_q, w_kv=w_kv, b_kv=b_kv,
                w_p=w_p, b_p=b_p)


# ----------------------------------------------------------------------------
# Encoder forward: a single fused pallas_call
# ----------------------------------------------------------------------------
def encoder_forward(ViTs, GPTs, prep):
    B, Sv, E = ViTs.shape
    _, St, _ = GPTs.shape
    H = prep["w_q"].shape[0]
    Hp = prep["w_ab"].shape[2]
    D = prep["b_p"].shape[1]
    S = Sv + St

    kernel = _make_encoder_kernel(B=B, Sv=Sv, St=St, E=E, H=H, Hp=Hp, D=D)
    vmem = pl.BlockSpec(memory_space=pltpu.MemorySpace.VMEM)

    T, features, h_all = pl.pallas_call(
        kernel,
        out_shape=(
            jax.ShapeDtypeStruct((B, S, E), jnp.float32),
            jax.ShapeDtypeStruct((B, D), jnp.float32),
            jax.ShapeDtypeStruct((B, S, Hp), jnp.float32),
        ),
        in_specs=[vmem] * 14,
        out_specs=(vmem, vmem, vmem),
        # Explicit (and generous) VMEM budget; actual footprint is < 1 MiB, so
        # this is safe on v5e / v6e / v7x alike.
        compiler_params=pltpu.CompilerParams(
            vmem_limit_bytes=32 * 1024 * 1024),
    )(ViTs, GPTs,
      prep["w_ab"], prep["b_ab"], prep["w_c"], prep["b_c"],
      prep["w_it"], prep["b_it"],
      prep["w_q"], prep["b_q"], prep["w_kv"], prep["b_kv"],
      prep["w_p"], prep["b_p"])

    vits_h = h_all[:, :Sv, :H]
    gpts_h = h_all[:, Sv:, :H]
    return T, features, (vits_h, gpts_h)


# ----------------------------------------------------------------------------
# Pure-JAX reference (matches the torch forward) for correctness checking
# ----------------------------------------------------------------------------
def encoder_reference(ViTs, GPTs, p):
    hp = functools.partial(jnp.matmul, precision=jax.lax.Precision.HIGHEST)

    def lin(x, w, b):
        return hp(x, w.T) + b

    vits_h = jax.nn.relu(lin(ViTs, p["affine_a_w"], p["affine_a_b"]))
    gpts_h = jax.nn.relu(lin(GPTs, p["affine_b_w"], p["affine_b_b"]))
    T = jax.nn.relu(lin(jnp.concatenate([vits_h, gpts_h], axis=1),
                        p["affine_c_w"], p["affine_c_b"]))
    img_cls = ViTs[:, 0, :]
    img_cls = img_cls / jnp.maximum(
        jnp.linalg.norm(img_cls, axis=-1, keepdims=True), 1e-12)
    image_features = lin(img_cls, p["image_fc_w"], p["image_fc_b"])
    text_features = lin(GPTs[:, 0, :], p["text_fc_w"], p["text_fc_b"])
    q = lin(text_features, p["mha_q_w"], p["mha_q_b"])
    k = lin(image_features, p["mha_k_w"], p["mha_k_b"])
    v = lin(image_features, p["mha_v_w"], p["mha_v_b"])
    s = hp(q, k.T) / math.sqrt(q.shape[-1])
    attn = jax.nn.softmax(s, axis=-1)
    aligned = lin(hp(attn, v), p["mha_o_w"], p["mha_o_b"])
    features = jax.nn.relu(lin(jnp.concatenate([text_features, aligned], 1),
                               p["proj_w"], p["proj_b"]))
    return T, features, (vits_h, gpts_h)


# ----------------------------------------------------------------------------
# Deterministic parameter init (shapes from Encoder.__init__, torch layout)
# ----------------------------------------------------------------------------
def init_params(key, hidden, embed, d_model):
    specs = {
        "image_fc": (hidden, embed),
        "text_fc": (hidden, embed),
        "affine_a": (hidden, embed),
        "affine_b": (hidden, embed),
        "affine_c": (embed, hidden),
        "mha_q": (hidden, hidden),
        "mha_k": (hidden, hidden),
        "mha_v": (hidden, hidden),
        "mha_o": (hidden, hidden),
        "proj": (d_model, 2 * hidden),
    }
    p = {}
    keys = jax.random.split(key, 2 * len(specs))
    for i, (name, (out_d, in_d)) in enumerate(specs.items()):
        p[name + "_w"] = jax.random.normal(
            keys[2 * i], (out_d, in_d), jnp.float32) * 0.05
        p[name + "_b"] = jax.random.normal(
            keys[2 * i + 1], (out_d,), jnp.float32) * 0.05
    return p


if __name__ == "__main__":
    # Small shapes consistent with the module's forward.
    B, S_V, S_T = 2, 8, 8
    EMBED, HIDDEN, D_MODEL = 128, 64, 128

    key = jax.random.PRNGKey(0)
    k_v, k_t, k_p = jax.random.split(key, 3)
    ViTs = jax.random.normal(k_v, (B, S_V, EMBED), jnp.float32)  # ViT hidden states
    GPTs = jax.random.normal(k_t, (B, S_T, EMBED), jnp.float32)  # GPT2 hidden states
    params = init_params(k_p, HIDDEN, EMBED, D_MODEL)

    # One-time parameter prep (transpose / pack / pad / fold / bf16 cast).
    prep = prepare_params(params, hidden=HIDDEN, embed=EMBED, d_model=D_MODEL)

    fwd = jax.jit(encoder_forward)
    T, features, (vits_h, gpts_h) = fwd(ViTs, GPTs, prep)
    jax.block_until_ready((T, features, vits_h, gpts_h))

    # Correctness check against a pure-JAX f32 reference (kernel uses bf16
    # MXU operands with f32 accumulation, hence the relaxed tolerances).
    T_r, feat_r, (v_r, g_r) = encoder_reference(ViTs, GPTs, params)
    np.testing.assert_allclose(np.asarray(T), np.asarray(T_r),
                               rtol=2e-2, atol=2e-2)
    np.testing.assert_allclose(np.asarray(features), np.asarray(feat_r),
                               rtol=2e-2, atol=2e-2)
    np.testing.assert_allclose(np.asarray(vits_h), np.asarray(v_r),
                               rtol=2e-2, atol=2e-2)
    np.testing.assert_allclose(np.asarray(gpts_h), np.asarray(g_r),
                               rtol=2e-2, atol=2e-2)

    assert T.shape == (B, S_V + S_T, EMBED)
    assert features.shape == (B, D_MODEL)
    assert vits_h.shape == (B, S_V, HIDDEN) and gpts_h.shape == (B, S_T, HIDDEN)
    print("KERNEL_OK")
</pallas_src>

<mosaic_0001>
module attributes {stable_mosaic.version = 11 : i64} {
  func.func @kernel(%arg0: memref<2x8x128xf32, #tpu.memory_space<vmem>>, %arg1: memref<2x8x128xf32, #tpu.memory_space<vmem>>, %arg2: memref<2x128x128xbf16, #tpu.memory_space<vmem>>, %arg3: memref<2x128xf32, #tpu.memory_space<vmem>>, %arg4: memref<128x128xbf16, #tpu.memory_space<vmem>>, %arg5: memref<1x128xf32, #tpu.memory_space<vmem>>, %arg6: memref<2x128x64xbf16, #tpu.memory_space<vmem>>, %arg7: memref<2x64xf32, #tpu.memory_space<vmem>>, %arg8: memref<64x64xbf16, #tpu.memory_space<vmem>>, %arg9: memref<1x64xf32, #tpu.memory_space<vmem>>, %arg10: memref<64x128xbf16, #tpu.memory_space<vmem>>, %arg11: memref<1x128xf32, #tpu.memory_space<vmem>>, %arg12: memref<2x64x128xbf16, #tpu.memory_space<vmem>>, %arg13: memref<1x128xf32, #tpu.memory_space<vmem>>, %arg14: memref<2x16x128xf32, #tpu.memory_space<vmem>>, %arg15: memref<2x128xf32, #tpu.memory_space<vmem>>, %arg16: memref<2x16x128xf32, #tpu.memory_space<vmem>>) attributes {dimension_semantics = [], scalar_prefetch = 0 : i64, scratch_operands = 0 : i64, tpu.core_type = #tpu.core_type<tc>} {
    %c0 = arith.constant 0 : index
    %c0_0 = arith.constant 0 : index
    %c0_1 = arith.constant 0 : index
    %0 = vector.load %arg0[%c0, %c0_0, %c0_1] : memref<2x8x128xf32, #tpu.memory_space<vmem>>, vector<2x8x128xf32>
    %c0_2 = arith.constant 0 : index
    %c0_3 = arith.constant 0 : index
    %c0_4 = arith.constant 0 : index
    %1 = vector.load %arg1[%c0_2, %c0_3, %c0_4] : memref<2x8x128xf32, #tpu.memory_space<vmem>>, vector<2x8x128xf32>
    %2 = vector.shape_cast %0 : vector<2x8x128xf32> to vector<16x128xf32>
    %3 = arith.truncf %2 : vector<16x128xf32> to vector<16x128xbf16>
    %4 = vector.shape_cast %1 : vector<2x8x128xf32> to vector<16x128xf32>
    %5 = arith.truncf %4 : vector<16x128xf32> to vector<16x128xbf16>
    %c0_5 = arith.constant 0 : index
    %c0_6 = arith.constant 0 : index
    %c0_7 = arith.constant 0 : index
    %6 = vector.load %arg2[%c0_5, %c0_6, %c0_7] : memref<2x128x128xbf16, #tpu.memory_space<vmem>>, vector<1x128x128xbf16>
    %7 = vector.shape_cast %6 : vector<1x128x128xbf16> to vector<128x128xbf16>
    %cst = arith.constant dense<0.000000e+00> : vector<16x128xf32>
    %8 = tpu.matmul %3, %7, %cst {dimension_numbers = #tpu.dot_dimension_numbers<[1], [0], [0], [1], [0, 0, 1, 1], [], []>} : vector<16x128xbf16>, vector<128x128xbf16>, vector<16x128xf32> -> vector<16x128xf32>
    %c0_8 = arith.constant 0 : index
    %c0_9 = arith.constant 0 : index
    %9 = vector.load %arg3[%c0_8, %c0_9] : memref<2x128xf32, #tpu.memory_space<vmem>>, vector<1x128xf32>
    %10 = vector.broadcast %9 : vector<1x128xf32> to vector<16x128xf32>
    %11 = arith.addf %8, %10 : vector<16x128xf32>
    %cst_10 = arith.constant 0.000000e+00 : f32
    %12 = vector.broadcast %cst_10 : f32 to vector<16x128xf32>
    %13 = arith.maximumf %11, %12 : vector<16x128xf32>
    %c1 = arith.constant 1 : index
    %c0_11 = arith.constant 0 : index
    %c0_12 = arith.constant 0 : index
    %14 = vector.load %arg2[%c1, %c0_11, %c0_12] : memref<2x128x128xbf16, #tpu.memory_space<vmem>>, vector<1x128x128xbf16>
    %15 = vector.shape_cast %14 : vector<1x128x128xbf16> to vector<128x128xbf16>
    %cst_13 = arith.constant dense<0.000000e+00> : vector<16x128xf32>
    %16 = tpu.matmul %5, %15, %cst_13 {dimension_numbers = #tpu.dot_dimension_numbers<[1], [0], [0], [1], [0, 0, 1, 1], [], []>} : vector<16x128xbf16>, vector<128x128xbf16>, vector<16x128xf32> -> vector<16x128xf32>
    %c1_14 = arith.constant 1 : index
    %c0_15 = arith.constant 0 : index
    %17 = vector.load %arg3[%c1_14, %c0_15] : memref<2x128xf32, #tpu.memory_space<vmem>>, vector<1x128xf32>
    %18 = vector.broadcast %17 : vector<1x128xf32> to vector<16x128xf32>
    %19 = arith.addf %16, %18 : vector<16x128xf32>
    %cst_16 = arith.constant 0.000000e+00 : f32
    %20 = vector.broadcast %cst_16 : f32 to vector<16x128xf32>
    %21 = arith.maximumf %19, %20 : vector<16x128xf32>
    %22 = vector.shape_cast %13 : vector<16x128xf32> to vector<2x8x128xf32>
    %c0_17 = arith.constant 0 : index
    %c0_18 = arith.constant 0 : index
    %c0_19 = arith.constant 0 : index
    %23 = vector.load %arg16[%c0_17, %c0_18, %c0_19] : memref<2x16x128xf32, #tpu.memory_space<vmem>>, vector<2x8x128xf32>
    tpu.vector_store %arg16[%c0_17, %c0_18, %c0_19], %22 {strides = array<i32>} : memref<2x16x128xf32, #tpu.memory_space<vmem>>, vector<2x8x128xf32>,
    %24 = vector.shape_cast %21 : vector<16x128xf32> to vector<2x8x128xf32>
    %c0_20 = arith.constant 0 : index
    %c8 = arith.constant 8 : index
    %c0_21 = arith.constant 0 : index
    %25 = vector.load %arg16[%c0_20, %c8, %c0_21] : memref<2x16x128xf32, #tpu.memory_space<vmem>>, vector<2x8x128xf32>
    tpu.vector_store %arg16[%c0_20, %c8, %c0_21], %24 {strides = array<i32>} : memref<2x16x128xf32, #tpu.memory_space<vmem>>, vector<2x8x128xf32>,
    %c0_22 = arith.constant 0 : index
    %c0_23 = arith.constant 0 : index
    %26 = vector.load %arg4[%c0_22, %c0_23] : memref<128x128xbf16, #tpu.memory_space<vmem>>, vector<128x128xbf16>
    %c0_24 = arith.constant 0 : index
    %c0_25 = arith.constant 0 : index
    %27 = vector.load %arg5[%c0_24, %c0_25] : memref<1x128xf32, #tpu.memory_space<vmem>>, vector<1x128xf32>
    %28 = arith.truncf %13 : vector<16x128xf32> to vector<16x128xbf16>
    %cst_26 = arith.constant dense<0.000000e+00> : vector<16x128xf32>
    %29 = tpu.matmul %28, %26, %cst_26 {dimension_numbers = #tpu.dot_dimension_numbers<[1], [0], [0], [1], [0, 0, 1, 1], [], []>} : vector<16x128xbf16>, vector<128x128xbf16>, vector<16x128xf32> -> vector<16x128xf32>
    %30 = vector.broadcast %27 : vector<1x128xf32> to vector<16x128xf32>
    %31 = arith.addf %29, %30 : vector<16x128xf32>
    %cst_27 = arith.constant 0.000000e+00 : f32
    %32 = vector.broadcast %cst_27 : f32 to vector<16x128xf32>
    %33 = arith.maximumf %31, %32 : vector<16x128xf32>
    %34 = arith.truncf %21 : vector<16x128xf32> to vector<16x128xbf16>
    %cst_28 = arith.constant dense<0.000000e+00> : vector<16x128xf32>
    %35 = tpu.matmul %34, %26, %cst_28 {dimension_numbers = #tpu.dot_dimension_numbers<[1], [0], [0], [1], [0, 0, 1, 1], [], []>} : vector<16x128xbf16>, vector<128x128xbf16>, vector<16x128xf32> -> vector<16x128xf32>
    %36 = vector.broadcast %27 : vector<1x128xf32> to vector<16x128xf32>
    %37 = arith.addf %35, %36 : vector<16x128xf32>
    %cst_29 = arith.constant 0.000000e+00 : f32
    %38 = vector.broadcast %cst_29 : f32 to vector<16x128xf32>
    %39 = arith.maximumf %37, %38 : vector<16x128xf32>
    %40 = vector.shape_cast %33 : vector<16x128xf32> to vector<2x8x128xf32>
    %c0_30 = arith.constant 0 : index
    %c0_31 = arith.constant 0 : index
    %c0_32 = arith.constant 0 : index
    %41 = vector.load %arg14[%c0_30, %c0_31, %c0_32] : memref<2x16x128xf32, #tpu.memory_space<vmem>>, vector<2x8x128xf32>
    tpu.vector_store %arg14[%c0_30, %c0_31, %c0_32], %40 {strides = array<i32>} : memref<2x16x128xf32, #tpu.memory_space<vmem>>, vector<2x8x128xf32>,
    %42 = vector.shape_cast %39 : vector<16x128xf32> to vector<2x8x128xf32>
    %c0_33 = arith.constant 0 : index
    %c8_34 = arith.constant 8 : index
    %c0_35 = arith.constant 0 : index
    %43 = vector.load %arg14[%c0_33, %c8_34, %c0_35] : memref<2x16x128xf32, #tpu.memory_space<vmem>>, vector<2x8x128xf32>
    tpu.vector_store %arg14[%c0_33, %c8_34, %c0_35], %42 {strides = array<i32>} : memref<2x16x128xf32, #tpu.memory_space<vmem>>, vector<2x8x128xf32>,
    %44 = vector.extract_strided_slice %0 {offsets = [0, 0, 0], sizes = [2, 1, 128], strides = [1, 1, 1]} : vector<2x8x128xf32> to vector<2x1x128xf32>
    %45 = vector.shape_cast %44 : vector<2x1x128xf32> to vector<2x128xf32>
    %46 = vector.extract_strided_slice %1 {offsets = [0, 0, 0], sizes = [2, 1, 128], strides = [1, 1, 1]} : vector<2x8x128xf32> to vector<2x1x128xf32>
    %47 = vector.shape_cast %46 : vector<2x1x128xf32> to vector<2x128xf32>
    %48 = arith.mulf %45, %45 : vector<2x128xf32>
    %cst_36 = arith.constant dense<0.000000e+00> : vector<2xf32>
    %49 = vector.multi_reduction <add>, %48, %cst_36 [1] : vector<2x128xf32> to vector<2xf32>
    %50 = vector.shape_cast %49 : vector<2xf32> to vector<2x1xf32>
    %cst_37 = arith.constant 1.000000e-24 : f32
    %51 = vector.broadcast %cst_37 : f32 to vector<2x1xf32>
    %52 = arith.maximumf %50, %51 : vector<2x1xf32>
    %53 = math.rsqrt %52 : vector<2x1xf32>
    %54 = vector.broadcast %53 : vector<2x1xf32> to vector<2x128xf32>
    %55 = arith.mulf %45, %54 : vector<2x128xf32>
    %56 = arith.truncf %55 : vector<2x128xf32> to vector<2x128xbf16>
    %c0_38 = arith.constant 0 : index
    %c0_39 = arith.constant 0 : index
    %c0_40 = arith.constant 0 : index
    %57 = vector.load %arg6[%c0_38, %c0_39, %c0_40] : memref<2x128x64xbf16, #tpu.memory_space<vmem>>, vector<1x128x64xbf16>
    %58 = vector.shape_cast %57 : vector<1x128x64xbf16> to vector<128x64xbf16>
    %cst_41 = arith.constant dense<0.000000e+00> : vector<2x64xf32>
    %59 = tpu.matmul %56, %58, %cst_41 {dimension_numbers = #tpu.dot_dimension_numbers<[1], [0], [0], [1], [0, 0, 1, 1], [], []>} : vector<2x128xbf16>, vector<128x64xbf16>, vector<2x64xf32> -> vector<2x64xf32>
    %c0_42 = arith.constant 0 : index
    %c0_43 = arith.constant 0 : index
    %60 = vector.load %arg7[%c0_42, %c0_43] : memref<2x64xf32, #tpu.memory_space<vmem>>, vector<1x64xf32>
    %61 = vector.broadcast %60 : vector<1x64xf32> to vector<2x64xf32>
    %62 = arith.addf %59, %61 : vector<2x64xf32>
    %63 = arith.truncf %47 : vector<2x128xf32> to vector<2x128xbf16>
    %c1_44 = arith.constant 1 : index
    %c0_45 = arith.constant 0 : index
    %c0_46 = arith.constant 0 : index
    %64 = vector.load %arg6[%c1_44, %c0_45, %c0_46] : memref<2x128x64xbf16, #tpu.memory_space<vmem>>, vector<1x128x64xbf16>
    %65 = vector.shape_cast %64 : vector<1x128x64xbf16> to vector<128x64xbf16>
    %cst_47 = arith.constant dense<0.000000e+00> : vector<2x64xf32>
    %66 = tpu.matmul %63, %65, %cst_47 {dimension_numbers = #tpu.dot_dimension_numbers<[1], [0], [0], [1], [0, 0, 1, 1], [], []>} : vector<2x128xbf16>, vector<128x64xbf16>, vector<2x64xf32> -> vector<2x64xf32>
    %c1_48 = arith.constant 1 : index
    %c0_49 = arith.constant 0 : index
    %67 = vector.load %arg7[%c1_48, %c0_49] : memref<2x64xf32, #tpu.memory_space<vmem>>, vector<1x64xf32>
    %68 = vector.broadcast %67 : vector<1x64xf32> to vector<2x64xf32>
    %69 = arith.addf %66, %68 : vector<2x64xf32>
    %70 = arith.truncf %69 : vector<2x64xf32> to vector<2x64xbf16>
    %c0_50 = arith.constant 0 : index
    %c0_51 = arith.constant 0 : index
    %71 = vector.load %arg8[%c0_50, %c0_51] : memref<64x64xbf16, #tpu.memory_space<vmem>>, vector<64x64xbf16>
    %cst_52 = arith.constant dense<0.000000e+00> : vector<2x64xf32>
    %72 = tpu.matmul %70, %71, %cst_52 {dimension_numbers = #tpu.dot_dimension_numbers<[1], [0], [0], [1], [0, 0, 1, 1], [], []>} : vector<2x64xbf16>, vector<64x64xbf16>, vector<2x64xf32> -> vector<2x64xf32>
    %c0_53 = arith.constant 0 : index
    %c0_54 = arith.constant 0 : index
    %73 = vector.load %arg9[%c0_53, %c0_54] : memref<1x64xf32, #tpu.memory_space<vmem>>, vector<1x64xf32>
    %74 = vector.broadcast %73 : vector<1x64xf32> to vector<2x64xf32>
    %75 = arith.addf %72, %74 : vector<2x64xf32>
    %76 = arith.truncf %62 : vector<2x64xf32> to vector<2x64xbf16>
    %c0_55 = arith.constant 0 : index
    %c0_56 = arith.constant 0 : index
    %77 = vector.load %arg10[%c0_55, %c0_56] : memref<64x128xbf16, #tpu.memory_space<vmem>>, vector<64x128xbf16>
    %cst_57 = arith.constant dense<0.000000e+00> : vector<2x128xf32>
    %78 = tpu.matmul %76, %77, %cst_57 {dimension_numbers = #tpu.dot_dimension_numbers<[1], [0], [0], [1], [0, 0, 1, 1], [], []>} : vector<2x64xbf16>, vector<64x128xbf16>, vector<2x128xf32> -> vector<2x128xf32>
    %c0_58 = arith.constant 0 : index
    %c0_59 = arith.constant 0 : index
    %79 = vector.load %arg11[%c0_58, %c0_59] : memref<1x128xf32, #tpu.memory_space<vmem>>, vector<1x128xf32>
    %80 = vector.broadcast %79 : vector<1x128xf32> to vector<2x128xf32>
    %81 = arith.addf %78, %80 : vector<2x128xf32>
    %82 = vector.extract_strided_slice %81 {offsets = [0, 0], sizes = [2, 64], strides = [1, 1]} : vector<2x128xf32> to vector<2x64xf32>
    %83 = vector.extract_strided_slice %81 {offsets = [0, 64], sizes = [2, 64], strides = [1, 1]} : vector<2x128xf32> to vector<2x64xf32>
    %cst_60 = arith.constant dense<0.000000e+00> : vector<2x2xf32>
    %84 = tpu.matmul %75, %82, %cst_60 {dimension_numbers = #tpu.dot_dimension_numbers<[1], [1], [0], [0], [0, 0, 1, 0], [], []>} : vector<2x64xf32>, vector<2x64xf32>, vector<2x2xf32> -> vector<2x2xf32>
    %cst_61 = arith.constant dense<0xFF800000> : vector<2xf32>
    %85 = vector.multi_reduction <maximumf>, %84, %cst_61 [1] : vector<2x2xf32> to vector<2xf32>
    %86 = vector.shape_cast %85 : vector<2xf32> to vector<2x1xf32>
    %87 = vector.broadcast %86 : vector<2x1xf32> to vector<2x2xf32>
    %88 = arith.subf %84, %87 : vector<2x2xf32>
    %89 = math.exp %88 : vector<2x2xf32>
    %cst_62 = arith.constant dense<0.000000e+00> : vector<2xf32>
    %90 = vector.multi_reduction <add>, %89, %cst_62 [1] : vector<2x2xf32> to vector<2xf32>
    %91 = vector.shape_cast %90 : vector<2xf32> to vector<2x1xf32>
    %92 = tpu.reciprocal %91 {approx = true} : vector<2x1xf32> -> vector<2x1xf32>
    %93 = vector.broadcast %92 : vector<2x1xf32> to vector<2x2xf32>
    %94 = arith.mulf %89, %93 : vector<2x2xf32>
    %cst_63 = arith.constant dense<0.000000e+00> : vector<2x64xf32>
    %95 = tpu.matmul %94, %83, %cst_63 {dimension_numbers = #tpu.dot_dimension_numbers<[1], [0], [0], [1], [0, 0, 1, 1], [], []>} : vector<2x2xf32>, vector<2x64xf32>, vector<2x64xf32> -> vector<2x64xf32>
    %96 = arith.truncf %69 : vector<2x64xf32> to vector<2x64xbf16>
    %c0_64 = arith.constant 0 : index
    %c0_65 = arith.constant 0 : index
    %c0_66 = arith.constant 0 : index
    %97 = vector.load %arg12[%c0_64, %c0_65, %c0_66] : memref<2x64x128xbf16, #tpu.memory_space<vmem>>, vector<1x64x128xbf16>
    %98 = vector.shape_cast %97 : vector<1x64x128xbf16> to vector<64x128xbf16>
    %cst_67 = arith.constant dense<0.000000e+00> : vector<2x128xf32>
    %99 = tpu.matmul %96, %98, %cst_67 {dimension_numbers = #tpu.dot_dimension_numbers<[1], [0], [0], [1], [0, 0, 1, 1], [], []>} : vector<2x64xbf16>, vector<64x128xbf16>, vector<2x128xf32> -> vector<2x128xf32>
    %100 = arith.truncf %95 : vector<2x64xf32> to vector<2x64xbf16>
    %c1_68 = arith.constant 1 : index
    %c0_69 = arith.constant 0 : index
    %c0_70 = arith.constant 0 : index
    %101 = vector.load %arg12[%c1_68, %c0_69, %c0_70] : memref<2x64x128xbf16, #tpu.memory_space<vmem>>, vector<1x64x128xbf16>
    %102 = vector.shape_cast %101 : vector<1x64x128xbf16> to vector<64x128xbf16>
    %cst_71 = arith.constant dense<0.000000e+00> : vector<2x128xf32>
    %103 = tpu.matmul %100, %102, %cst_71 {dimension_numbers = #tpu.dot_dimension_numbers<[1], [0], [0], [1], [0, 0, 1, 1], [], []>} : vector<2x64xbf16>, vector<64x128xbf16>, vector<2x128xf32> -> vector<2x128xf32>
    %104 = arith.addf %99, %103 : vector<2x128xf32>
    %c0_72 = arith.constant 0 : index
    %c0_73 = arith.constant 0 : index
    %105 = vector.load %arg13[%c0_72, %c0_73] : memref<1x128xf32, #tpu.memory_space<vmem>>, vector<1x128xf32>
    %106 = vector.broadcast %105 : vector<1x128xf32> to vector<2x128xf32>
    %107 = arith.addf %104, %106 : vector<2x128xf32>
    %cst_74 = arith.constant 0.000000e+00 : f32
    %108 = vector.broadcast %cst_74 : f32 to vector<2x128xf32>
    %109 = arith.maximumf %107, %108 : vector<2x128xf32>
    %c0_75 = arith.constant 0 : index
    %c0_76 = arith.constant 0 : index
    %110 = vector.load %arg15[%c0_75, %c0_76] : memref<2x128xf32, #tpu.memory_space<vmem>>, vector<2x128xf32>
    tpu.vector_store %arg15[%c0_75, %c0_76], %109 {strides = array<i32>} : memref<2x128xf32, #tpu.memory_space<vmem>>, vector<2x128xf32>,
    return
  }
}

</mosaic_0001>

<bundles_post_ra>
// kernel: encoder_forward.1
= control target key start
LH: loop header
LB: loop body
LE: loop exit
PB: predicated region body
PF: predicated region fallthrough
CT: control target
= control target key end

     0   :  { %s2567_s0 = inlined_call_operand.hbm [shape: f32[2,8,128], index: 0, kind: input, shape index: {}]   ;;  %s2568_s1 = inlined_call_operand.hbm [shape: f32[2,8,128], index: 1, kind: input, shape index: {}]   ;;  %s2569_s2 = inlined_call_operand.vmem [shape: bf16[2,128,128], index: 2, kind: input, shape index: {}]   ;;  %s2570_s3 = inlined_call_operand.vmem [shape: f32[2,128], index: 3, kind: input, shape index: {}]   ;;  %s2571_s4 = inlined_call_operand.vmem [shape: bf16[128,128], index: 4, kind: input, shape index: {}]   ;;  %s2572_s5 = inlined_call_operand.hbm [shape: f32[1,128], index: 5, kind: input, shape index: {}]   ;;  %s2573_s6 = inlined_call_operand.vmem [shape: bf16[2,128,64], index: 6, kind: input, shape index: {}]   ;;  %s2574_s7 = inlined_call_operand.hbm [shape: f32[2,64], index: 7, kind: input, shape index: {}]   ;;  %s2575_s8 = inlined_call_operand.vmem [shape: bf16[64,64], index: 8, kind: input, shape index: {}]   ;;  %s2576_s9 = inlined_call_operand.hbm [shape: f32[1,64], index: 9, kind: input, shape index: {}]   ;;  %s2577_s10 = inlined_call_operand.hbm [shape: bf16[64,128], index: 10, kind: input, shape index: {}]   ;;  %s2578_s11 = inlined_call_operand.hbm [shape: f32[1,128], index: 11, kind: input, shape index: {}]   ;;  %s2579_s12 = inlined_call_operand.hbm [shape: bf16[2,64,128], index: 12, kind: input, shape index: {}]   ;;  %s2580_s13 = inlined_call_operand.hbm [shape: f32[1,128], index: 13, kind: input, shape index: {}]   ;;  %s2581_s14 = inlined_call_operand.hbm [shape: f32[2,16,128], index: 14, kind: output, shape index: {0}]   ;;  %s2582_s15 = inlined_call_operand.hbm [shape: f32[2,128], index: 15, kind: output, shape index: {1}]   ;;  %s2583_s16 = inlined_call_operand.vmem [shape: f32[2,16,128], index: 16, kind: output, shape index: {2}]  }
   0x1   :  { %2587 = sst [smem:[#allocation27_spill]] %s2567_s0 }
   0x2   :  { %22 = vsyncpa [#allocation3], 0 }
   0x3   :  { %23 = vsyncpa [#allocation6], 0 }
   0x4   :  { %24 = vsyncpa [#allocation9], 0 }
   0x5   :  { %25 = vsyncpa [#allocation12], 0 }
   0x6   :  { %26 = vsyncpa [#allocation15], 0 }
   0x7   :  { %27 = vsyncpa [#allocation4], 0 }
   0x8   :  { %28 = vsyncpa [#allocation19], 0  ;;  %s2048_s21 = smov [#allocation5]   ;;  %s2049_s23 = smov [#allocation8]  }
   0x9   :  { %s46_s22 = sshll.u32 %s2048_s21, 4  ;;  %s77_s24 = sshll.u32 %s2049_s23, 4  ;;  %s47_s22 = int_to_ptr.vmem [resolvable:$true] %s46_s22  ;;  %s78_s24 = int_to_ptr.vmem [resolvable:$true] %s77_s24 }
   0xa   :  { %s1792_s27 = scalar_lea.hbm %s2568_s1, 256 }
   0xb   :  { %p1793_p0 = scmp.ne.s32.totalorder %s2568_s1, %s1792_s27  ;;  %p1796_p1 = scmp.lt.u32.totalorder %s1792_s27, %s2568_s1 }
   0xd   :  { %p1798_p2 = pnand %p1796_p1, %p1793_p0 }
   0xf   :  { %1801 = shalt.err (!%p1798_p2)
}
  0x10   :  { %s1802_s17 = scalar_lea.vmem %s47_s22, 256  ;;  %p1807_p4 = scmp.lt.s32.totalorder %s47_s22, %s47_s22 }
  0x11   :  { %p1803_p3 = scmp.ne.s32.totalorder %s47_s22, %s1802_s17  ;;  %p1808_p5 = scmp.lt.s32.totalorder %s1802_s17, %s1802_s17 }
  0x13   :  { %p1809_p6 = por %p1808_p5, %p1807_p4 }
  0x15   :  { %p1810_p7 = pnand %p1809_p6, %p1803_p3 }
  0x17   :  { %1813 = shalt.err (!%p1810_p7)
}
  0x18   :  { %s2585_s18 = smov 128   ;;  %s2051_s19 = smov 8  }
  0x19   :  { %52 = dma.hbm_to_vmem [thread:$0]  %s2568_s1, 256, %s47_s22, [#allocation6], %s2585_s18, %s2585_s18, %s2051_s19  }
  0x1a   :  { %s1814_s26 = scalar_lea.hbm %s2574_s7, 32 }
  0x1b   :  { %p1815_p8 = scmp.ne.s32.totalorder %s2574_s7, %s1814_s26  ;;  %p1818_p9 = scmp.lt.u32.totalorder %s1814_s26, %s2574_s7 }
  0x1d   :  { %p1820_p10 = pnand %p1818_p9, %p1815_p8 }
  0x1f   :  { %1823 = shalt.err (!%p1820_p10)
}
  0x20   :  { %s1824_s0 = scalar_lea.vmem %s78_s24, 32  ;;  %p1829_p12 = scmp.lt.s32.totalorder %s78_s24, %s78_s24 }
  0x21   :  { %p1825_p11 = scmp.ne.s32.totalorder %s78_s24, %s1824_s0  ;;  %p1830_p13 = scmp.lt.s32.totalorder %s1824_s0, %s1824_s0 }
  0x23   :  { %p1831_p0 = por %p1830_p13, %p1829_p12 }
  0x25   :  { %p1832_p1 = pnand %p1831_p0, %p1825_p11 }
  0x27   :  { %1835 = shalt.err (!%p1832_p1)
}
  0x28   :  { %80 = dma.hbm_to_vmem [thread:$0]  %s2574_s7, 32, %s78_s24, [#allocation9]  }
  0x29   :  { %s2052_s17 = smov [#allocation11]   ;;  %s1836_s25 = scalar_lea.hbm %s2577_s10, 512 }
  0x2a   :  { %s98_s20 = sshll.u32 %s2052_s17, 4  ;;  %p1837_p2 = scmp.ne.s32.totalorder %s2577_s10, %s1836_s25  ;;  %s99_s20 = int_to_ptr.vmem [resolvable:$true] %s98_s20 }
  0x2b   :  { %p1840_p3 = scmp.lt.u32.totalorder %s1836_s25, %s2577_s10 }
  0x2d   :  { %p1842_p4 = pnand %p1840_p3, %p1837_p2 }
  0x2f   :  { %1845 = shalt.err (!%p1842_p4)
}
  0x30   :  { %s1846_s30 = scalar_lea.vmem %s99_s20, 512  ;;  %p1851_p6 = scmp.lt.s32.totalorder %s99_s20, %s99_s20 }
  0x31   :  { %p1847_p5 = scmp.ne.s32.totalorder %s99_s20, %s1846_s30  ;;  %p1852_p7 = scmp.lt.s32.totalorder %s1846_s30, %s1846_s30 }
  0x33   :  { %p1853_p8 = por %p1852_p7, %p1851_p6 }
  0x35   :  { %p1854_p9 = pnand %p1853_p8, %p1847_p5 }
  0x37   :  { %1857 = shalt.err (!%p1854_p9)
}
  0x38   :  { %s2053_s7 = smov 64   ;;  %s2054_s24 = smov 4  }
  0x39   :  { %104 = dma.hbm_to_vmem [thread:$0]  %s2577_s10, 512, %s99_s20, [#allocation12], %s2053_s7, %s2053_s7, %s2054_s24  }
  0x3a   :  { %s2055_s22 = smov [#allocation14]   ;;  %s2056_s21 = smov [#allocation2]  }
  0x3b   :  { %s120_s17 = sshll.u32 %s2055_s22, 4  ;;  %s34_s23 = sshll.u32 %s2056_s21, 4  ;;  %s121_s17 = int_to_ptr.vmem [resolvable:$true] %s120_s17  ;;  %s35_s23 = int_to_ptr.vmem [resolvable:$true] %s34_s23 }
  0x3c   :  { %s1858_s27 = scalar_lea.hbm %s2579_s12, 1024 }
  0x3d   :  { %p1859_p10 = scmp.ne.s32.totalorder %s2579_s12, %s1858_s27  ;;  %p1862_p11 = scmp.lt.u32.totalorder %s1858_s27, %s2579_s12 }
  0x3f   :  { %p1864_p12 = pnand %p1862_p11, %p1859_p10 }
  0x41   :  { %1867 = shalt.err (!%p1864_p12)
}
  0x42   :  { %s1868_s10 = scalar_lea.vmem %s121_s17, 1024  ;;  %p1873_p0 = scmp.lt.s32.totalorder %s121_s17, %s121_s17 }
  0x43   :  { %p1869_p13 = scmp.ne.s32.totalorder %s121_s17, %s1868_s10  ;;  %p1874_p1 = scmp.lt.s32.totalorder %s1868_s10, %s1868_s10 }
  0x45   :  { %p1875_p2 = por %p1874_p1, %p1873_p0 }
  0x47   :  { %p1876_p3 = pnand %p1875_p2, %p1869_p13 }
  0x49   :  { %1879 = shalt.err (!%p1876_p3)
}
  0x4a   :  { %126 = dma.hbm_to_vmem [thread:$0]  %s2579_s12, 1024, %s121_s17, [#allocation15], %s2053_s7, %s2053_s7, %s2054_s24  }
  0x4b   :  { %s2588_s18 = sld [smem:[#allocation27_spill]] }
  0x51   :  { %s1880_s21 = scalar_lea.hbm %s2588_s18, 256 }
  0x52   :  { %p1881_p4 = scmp.ne.s32.totalorder %s2588_s18, %s1880_s21  ;;  %p1884_p5 = scmp.lt.u32.totalorder %s1880_s21, %s2588_s18 }
  0x54   :  { %p1886_p6 = pnand %p1884_p5, %p1881_p4 }
  0x56   :  { %1889 = shalt.err (!%p1886_p6)
}
  0x57   :  { %s1890_s29 = scalar_lea.vmem %s35_s23, 256  ;;  %p1895_p8 = scmp.lt.s32.totalorder %s35_s23, %s35_s23 }
  0x58   :  { %p1891_p7 = scmp.ne.s32.totalorder %s35_s23, %s1890_s29  ;;  %p1896_p9 = scmp.lt.s32.totalorder %s1890_s29, %s1890_s29 }
  0x5a   :  { %p1897_p10 = por %p1896_p9, %p1895_p8 }
  0x5c   :  { %p1898_p11 = pnand %p1897_p10, %p1891_p7 }
  0x5e   :  { %1901 = shalt.err (!%p1898_p11)
}
  0x5f   :  { %s2589_s12 = smov 128   ;;  %s2057_s30 = smov [#allocation7]  }
  0x60   :  { %40 = dma.hbm_to_vmem [thread:$0]  %s2588_s18, 256, %s35_s23, [#allocation3], %s2589_s12, %s2589_s12, %s2051_s19  }
  0x61   :  { %s65_s10 = sshll.u32 %s2057_s30, 4  ;;  %s2058_s20 = smov [#allocation10]   ;;  %s66_s10 = int_to_ptr.vmem [resolvable:$true] %s65_s10 }
  0x62   :  { %s89_s0 = sshll.u32 %s2058_s20, 4  ;;  %s1902_s21 = scalar_lea.hbm %s2572_s5, 16  ;;  %s90_s0 = int_to_ptr.vmem [resolvable:$true] %s89_s0 }
  0x63   :  { %p1903_p12 = scmp.ne.s32.totalorder %s2572_s5, %s1902_s21  ;;  %p1906_p13 = scmp.lt.u32.totalorder %s1902_s21, %s2572_s5 }
  0x65   :  { %p1908_p0 = pnand %p1906_p13, %p1903_p12 }
  0x67   :  { %1911 = shalt.err (!%p1908_p0)
}
  0x68   :  { %s1912_s23 = scalar_lea.vmem %s66_s10, 16  ;;  %s1916_s18 = scalar_lea.vmem %s66_s10, 32 }
  0x69   :  { %p1913_p1 = scmp.ne.s32.totalorder %s66_s10, %s1912_s23  ;;  %p1917_p2 = scmp.lt.s32.totalorder %s66_s10, %s66_s10 }
  0x6a   :  { %p1918_p3 = scmp.lt.s32.totalorder %s1916_s18, %s1912_s23 }
  0x6c   :  { %p1919_p4 = por %p1918_p3, %p1917_p2 }
  0x6e   :  { %p1920_p5 = pnand %p1919_p4, %p1913_p1 }
  0x70   :  { %1923 = shalt.err (!%p1920_p5)
}
  0x71   :  { %68 = dma.hbm_to_vmem [thread:$0]  %s2572_s5, 16, %s66_s10, [#allocation6]  }
  0x72   :  { %s1924_s20 = scalar_lea.hbm %s2576_s9, 16 }
  0x73   :  { %p1925_p6 = scmp.ne.s32.totalorder %s2576_s9, %s1924_s20  ;;  %p1928_p7 = scmp.lt.u32.totalorder %s1924_s20, %s2576_s9 }
  0x75   :  { %p1930_p8 = pnand %p1928_p7, %p1925_p6 }
  0x77   :  { %1933 = shalt.err (!%p1930_p8)
}
  0x78   :  { %s1934_s26 = scalar_lea.vmem %s90_s0, 16  ;;  %s1938_s27 = scalar_lea.vmem %s90_s0, 32 }
  0x79   :  { %p1935_p9 = scmp.ne.s32.totalorder %s90_s0, %s1934_s26  ;;  %p1939_p10 = scmp.lt.s32.totalorder %s90_s0, %s90_s0 }
  0x7a   :  { %p1940_p11 = scmp.lt.s32.totalorder %s1938_s27, %s1934_s26 }
  0x7c   :  { %p1941_p12 = por %p1940_p11, %p1939_p10 }
  0x7e   :  { %p1942_p13 = pnand %p1941_p12, %p1935_p9 }
  0x80   :  { %1945 = shalt.err (!%p1942_p13)
}
  0x81   :  { %92 = dma.hbm_to_vmem [thread:$0]  %s2576_s9, 16, %s90_s0, [#allocation9]  }
  0x82   :  { %s2059_s28 = smov [#allocation13]   ;;  %s2060_s18 = smov [#allocation16]  }
  0x83   :  { %s111_s23 = sshll.u32 %s2059_s28, 4  ;;  %s133_s29 = sshll.u32 %s2060_s18, 4  ;;  %s112_s23 = int_to_ptr.vmem [resolvable:$true] %s111_s23  ;;  %s134_s29 = int_to_ptr.vmem [resolvable:$true] %s133_s29 }
  0x84   :  { %s1946_s30 = scalar_lea.hbm %s2578_s11, 16 }
  0x85   :  { %p1947_p0 = scmp.ne.s32.totalorder %s2578_s11, %s1946_s30  ;;  %p1950_p1 = scmp.lt.u32.totalorder %s1946_s30, %s2578_s11 }
  0x87   :  { %p1952_p2 = pnand %p1950_p1, %p1947_p0 }
  0x89   :  { %1955 = shalt.err (!%p1952_p2)
}
  0x8a   :  { %s1956_s9 = scalar_lea.vmem %s112_s23, 16  ;;  %s1960_s0 = scalar_lea.vmem %s112_s23, 32 }
  0x8b   :  { %p1957_p3 = scmp.ne.s32.totalorder %s112_s23, %s1956_s9  ;;  %p1961_p4 = scmp.lt.s32.totalorder %s112_s23, %s112_s23 }
  0x8c   :  { %p1962_p5 = scmp.lt.s32.totalorder %s1960_s0, %s1956_s9 }
  0x8e   :  { %p1963_p6 = por %p1962_p5, %p1961_p4 }
  0x90   :  { %p1964_p7 = pnand %p1963_p6, %p1957_p3 }
  0x92   :  { %1967 = shalt.err (!%p1964_p7)
}
  0x93   :  { %114 = dma.hbm_to_vmem [thread:$0]  %s2578_s11, 16, %s112_s23, [#allocation12]  }
  0x94   :  { %s1968_s10 = scalar_lea.hbm %s2580_s13, 16 }
  0x95   :  { %p1969_p8 = scmp.ne.s32.totalorder %s2580_s13, %s1968_s10  ;;  %p1972_p9 = scmp.lt.u32.totalorder %s1968_s10, %s2580_s13 }
  0x97   :  { %p1974_p10 = pnand %p1972_p9, %p1969_p8 }
  0x99   :  { %1977 = shalt.err (!%p1974_p10)
}
  0x9a   :  { %s1978_s30 = scalar_lea.vmem %s134_s29, 16  ;;  %s1982_s20 = scalar_lea.vmem %s134_s29, 32 }
  0x9b   :  { %p1979_p11 = scmp.ne.s32.totalorder %s134_s29, %s1978_s30  ;;  %p1983_p12 = scmp.lt.s32.totalorder %s134_s29, %s134_s29 }
  0x9c   :  { %p1984_p13 = scmp.lt.s32.totalorder %s1982_s20, %s1978_s30 }
  0x9e   :  { %p1985_p0 = por %p1984_p13, %p1983_p12 }
  0xa0   :  { %p1986_p1 = pnand %p1985_p0, %p1979_p11 }
  0xa2   :  { %1989 = shalt.err (!%p1986_p1)
}
  0xa3   :  { %136 = dma.hbm_to_vmem [thread:$0]  %s2580_s13, 16, %s134_s29, [#allocation15]  }
  0xa4   :  { %2034 = dma.done.wait [#allocation3], 256  }
  0xa5   :  { %2035 = vsyncadd [#allocation3], 4294967040 }
  0xa6   :  { %2036 = dma.done.wait [#allocation6], 272  }
  0xa7   :  { %2037 = vsyncadd [#allocation6], 4294967024 }
  0xa8   :  { %2038 = dma.done.wait [#allocation9], 48  }
  0xa9   :  { %2039 = vsyncadd [#allocation9], 4294967248 }
  0xaa   :  { %2040 = dma.done.wait [#allocation12], 528  }
  0xab   :  { %2041 = vsyncadd [#allocation12], 4294966768 }
  0xac   :  { %2042 = dma.done.wait [#allocation15], 1040  }
  0xad   :  { %2043 = vsyncadd [#allocation15], 4294966256  ;;  %v2061_v0 = vmov 0.0   ;;  %vm2062_vm0 = vmmov 0   ;;  %v1730_v1 = vld [vmem:[%s2569_s2] sm:$0xff]   ;;  %v1732_v3 = vld [vmem:[%s2569_s2 + $0x8] sm:$0xff]  }
  0xae   :  { %1535 = vmatprep.subr.bf16.mxu0 %v2061_v0  ;;  %1555 = vmatprep.subr.bf16.mxu1 %v2061_v0  ;;  %v1731_v2 = vld [vmem:[%s2569_s2 + $0x40] sm:$0xff]   ;;  %v1733_v4 = vld [vmem:[%s2569_s2 + $0x48] sm:$0xff]   ;;  %v1734_v5 = vld [vmem:[%s2569_s2 + $0x10] sm:$0xff]   ;;  %vm568_vm1 = vcmask 1041409   ;;  %vm571_vm2 = vcmask 1041408   ;;  %vm862_vm3 = vcmask 523264  }
  0xaf   :  { %1551 = vmatprep.mubr.msk.bf16.mxu0 %vm2062_vm0, %v2061_v0  ;;  %1571 = vmatprep.mubr.msk.bf16.mxu1 %vm2062_vm0, %v2061_v0  ;;  %v1735_v6 = vld [vmem:[%s2569_s2 + $0x50] sm:$0xff]   ;;  %v1736_v7 = vld [vmem:[%s2569_s2 + $0x18] sm:$0xff]   ;;  %v1738_v9 = vld [vmem:[%s2569_s2 + $0x20] sm:$0xff]   ;;  %vm1065_vm4 = vcmask 9216   ;;  %vm1079_vm5 = vcmask 15360  }
  0xb0   :  { %1536 = vmatpush3.bf16.msra.mxu0 %v1730_v1  ;;  %1556 = vmatpush3.bf16.msra.mxu1 %v1731_v2  ;;  %v1737_v8 = vld [vmem:[%s2569_s2 + $0x58] sm:$0xff]   ;;  %v1739_v10 = vld [vmem:[%s2569_s2 + $0x60] sm:$0xff]   ;;  %v2313_v12 = vld [vmem:[#allocation2 + $0x8] sm:$0xff] }
  0xb1   :  { %1537 = vmatprep.subr.bf16.mxu0 %v2061_v0  ;;  %1557 = vmatprep.subr.bf16.mxu1 %v2061_v0  ;;  %v2311_v11 = vld [vmem:[#allocation2] sm:$0xff]  ;;  %v167_v13 = vld [vmem:[#allocation5] sm:$0xff]  ;;  %v564_v15 = vmul.f32 %v2313_v12, %v2313_v12  ;;  %v168_v16 = vld [vmem:[#allocation5 + $0x8] sm:$0xff] }
  0xb2   :  { %v563_v14 = vmul.f32 %v2311_v11, %v2311_v11  ;;  %v702_v17 = vpack.c.bf16 %v167_v13, %v167_v13  ;;  %v1740_v18 = vld [vmem:[%s2569_s2 + $0x28] sm:$0xff]   ;;  %v703_v19 = vpack.c.bf16 %v168_v16, %v168_v16  ;;  %v1742_v26 = vld [vmem:[%s2569_s2 + $0x30] sm:$0xff]   ;;  %v1744_v29 = vld [vmem:[%s2569_s2 + $0x38] sm:$0xff]   ;;  %v169_v33 = vpack.c.bf16 %v2313_v12, %v2311_v11 }
  0xb3   :  { %v567_v20 = vrot.slane %v564_v15, 7  ;;  %v1741_v21 = vld [vmem:[%s2569_s2 + $0x68] sm:$0xff]   ;;  %v1743_v28 = vld [vmem:[%s2569_s2 + $0x70] sm:$0xff]   ;;  %v1745_v31 = vld [vmem:[%s2569_s2 + $0x78] sm:$0xff]   ;;  %v170_v34 = vpack.c.bf16 %v168_v16, %v167_v13 }
  0xb4   :  { %1538 = vmatpush3.bf16.msra.mxu0 %v1732_v3  ;;  %1558 = vmatpush3.bf16.msra.mxu1 %v1733_v4  ;;  %v728_v22 = vunpack.c.l.b16 %v702_v17  ;;  %v729_v23 = vunpack.c.l.b16 %v703_v19  ;;  %v1746_v32 = vld [vmem:[%s2571_s4] sm:$0xff]   ;;  %v1747_v35 = vld [vmem:[%s2571_s4 + $0x8] sm:$0xff]   ;;  %v1748_v36 = vld [vmem:[%s2571_s4 + $0x10] sm:$0xff]  }
  0xb5   :  { %1539 = vmatprep.subr.bf16.mxu0 %v2061_v0  ;;  %1559 = vmatprep.subr.bf16.mxu1 %v2061_v0  ;;  %v569_v24 = vsel %vm568_vm1, %v567_v20, %v563_v14  ;;  %v1749_v37 = vld [vmem:[%s2571_s4 + $0x18] sm:$0xff]   ;;  %v1750_v38 = vld [vmem:[%s2571_s4 + $0x20] sm:$0xff]   ;;  %v1751_v39 = vld [vmem:[%s2571_s4 + $0x28] sm:$0xff]  }
  0xb6   :  { %v572_v25 = vsel %vm571_vm2, %v569_v24, 0.0  ;;  %v730_v27 = vrot.slane %v729_v23, 7  ;;  %v1752_v40 = vld [vmem:[%s2571_s4 + $0x30] sm:$0xff]   ;;  %v1753_v41 = vld [vmem:[%s2571_s4 + $0x38] sm:$0xff]   ;;  %v1353_v43 = vld [vmem:[%s2570_s3] ss:$0 sm:$0xff] }
  0xb7   :  { %573 = vadd.xlane.f32.xlu0 %v572_v25  ;;  %v1378_v44 = vld [vmem:[%s2570_s3 + $0x1] ss:$0 sm:$0xff]  ;;  %v1756_v3 = vld [vmem:[%s2573_s6 + $0x8] sm:$0xff]   ;;  %v1768_v24 = vld [vmem:[%s2573_s6 + $0x38] sm:$0xff]  }
  0xb8   :  { %1540 = vmatpush3.bf16.msra.mxu0 %v1734_v5  ;;  %1560 = vmatpush3.bf16.msra.mxu1 %v1735_v6  ;;  %v2342_v30 = vsel %vm568_vm1, %v730_v27, %v728_v22  ;;  %v1754_v62 = vld [vmem:[%s2573_s6] sm:$0xff]   ;;  %v1757_v4 = vld [vmem:[%s2573_s6 + $0x48] sm:$0xff]   ;;  %v1758_v6 = vld [vmem:[%s2573_s6 + $0x10] sm:$0xff]  }
  0xb9   :  { %1541 = vmatprep.subr.bf16.mxu0 %v2061_v0  ;;  %1561 = vmatprep.subr.bf16.mxu1 %v2061_v0  ;;  %v1755_v1 = vld [vmem:[%s2573_s6 + $0x40] sm:$0xff]   ;;  %v1769_v25 = vld [vmem:[%s2573_s6 + $0x78] sm:$0xff]   ;;  %v732_v27 = vpack.c.b16 %v2342_v30, %v2342_v30 }
  0xba   :  { %v1762_v14 = vld [vmem:[%s2573_s6 + $0x20] sm:$0xff]  }
  0xbb   :  { %v1763_v15 = vld [vmem:[%s2573_s6 + $0x60] sm:$0xff]  }
  0xbc   :  { %1542 = vmatpush3.bf16.msra.mxu0 %v1736_v7  ;;  %1562 = vmatpush3.bf16.msra.mxu1 %v1737_v8  ;;  %v1759_v7 = vld [vmem:[%s2573_s6 + $0x50] sm:$0xff]   ;;  %v1771_v30 = vld [vmem:[%s2575_s8] sm:$0xff]  }
  0xbd   :  { %1543 = vmatprep.subr.bf16.mxu0 %v2061_v0  ;;  %1563 = vmatprep.subr.bf16.mxu1 %v2061_v0 }
  0xc0   :  { %1544 = vmatpush3.bf16.msra.mxu0 %v1738_v9  ;;  %1564 = vmatpush3.bf16.msra.mxu1 %v1739_v10  ;;  %v1760_v9 = vld [vmem:[%s2573_s6 + $0x18] sm:$0xff]  }
  0xc1   :  { %1545 = vmatprep.subr.bf16.mxu0 %v2061_v0  ;;  %1565 = vmatprep.subr.bf16.mxu1 %v2061_v0  ;;  %v1761_v10 = vld [vmem:[%s2573_s6 + $0x58] sm:$0xff]  }
  0xc4   :  { %1546 = vmatpush3.bf16.msra.mxu0 %v1740_v18  ;;  %1566 = vmatpush3.bf16.msra.mxu1 %v1741_v21  ;;  %v1765_v18 = vld [vmem:[%s2573_s6 + $0x68] sm:$0xff]   ;;  %v1767_v21 = vld [vmem:[%s2573_s6 + $0x70] sm:$0xff]  }
  0xc5   :  { %1547 = vmatprep.subr.bf16.mxu0 %v2061_v0  ;;  %1567 = vmatprep.subr.bf16.mxu1 %v2061_v0 }
  0xc8   :  { %1548 = vmatpush3.bf16.msra.mxu0 %v1742_v26  ;;  %1568 = vmatpush3.bf16.msra.mxu1 %v1743_v28 }
  0xc9   :  { %1549 = vmatprep.subr.bf16.mxu0 %v2061_v0  ;;  %1569 = vmatprep.subr.bf16.mxu1 %v2061_v0 }
  0xcc   :  { %1550 = vmatpush3.bf16.msra.mxu0 %v1744_v29  ;;  %1570 = vmatpush3.bf16.msra.mxu1 %v1745_v31  ;;  %v1770_v29 = vld [vmem:[#allocation11] sm:$0xff]   ;;  %v1772_v31 = vld [vmem:[#allocation11 + $0x8] sm:$0xff]  }
  0xcd   :  { %1575 = vmatprep.subr.bf16.mxu0 %v2061_v0  ;;  %1595 = vmatprep.subr.bf16.mxu1 %v2061_v0 }
  0xcf   :  { %1552 = vmatmul.mubr.bf16.vlgmr.msra.gmra.mrb[0].mxu0 %v169_v33  ;;  %1572 = vmatmul.mubr.bf16.vlgmr.msra.gmra.mrb[0].mxu1 %v170_v34  ;;  %v1774_v33 = vld [vmem:[#allocation11 + $0x10] sm:$0xff]  }
  0xd0   :  { %1576 = vmatpush3.bf16.msra.mxu0 %v1746_v32  ;;  %1596 = vmatpush3.bf16.msra.mxu1 %v1746_v32  ;;  %v1773_v32 = vld [vmem:[%s2575_s8 + $0x8] sm:$0xff]   ;;  %v1775_v34 = vld [vmem:[%s2575_s8 + $0x10] sm:$0xff]  }
  0xd1   :  { %1577 = vmatprep.subr.bf16.mxu0 %v2061_v0  ;;  %1597 = vmatprep.subr.bf16.mxu1 %v2061_v0 }
  0xd2   :  { %1591 = vmatprep.mubr.msk.bf16.mxu0 %vm2062_vm0, %v2061_v0  ;;  %1611 = vmatprep.mubr.msk.bf16.mxu1 %vm2062_vm0, %v2061_v0 }
  0xd4   :  { %1578 = vmatpush3.bf16.msra.mxu0 %v1747_v35  ;;  %1598 = vmatpush3.bf16.msra.mxu1 %v1747_v35  ;;  %v1776_v35 = vld [vmem:[#allocation11 + $0x18] sm:$0xff]  }
  0xd5   :  { %1579 = vmatprep.subr.bf16.mxu0 %v2061_v0  ;;  %1599 = vmatprep.subr.bf16.mxu1 %v2061_v0 }
  0xd8   :  { %1580 = vmatpush3.bf16.msra.mxu0 %v1748_v36  ;;  %1600 = vmatpush3.bf16.msra.mxu1 %v1748_v36  ;;  %v1777_v36 = vld [vmem:[%s2575_s8 + $0x18] sm:$0xff]   ;;  %s2063_s8 = smov [#allocation17]  }
  0xd9   :  { %1581 = vmatprep.subr.bf16.mxu0 %v2061_v0  ;;  %1601 = vmatprep.subr.bf16.mxu1 %v2061_v0 }
  0xdc   :  { %1582 = vmatpush3.bf16.msra.mxu0 %v1749_v37  ;;  %1602 = vmatpush3.bf16.msra.mxu1 %v1749_v37  ;;  %v1387_v37 = vld [vmem:[#allocation7] ss:$0 sm:$0xff] }
  0xdd   :  { %1583 = vmatprep.subr.bf16.mxu0 %v2061_v0  ;;  %1603 = vmatprep.subr.bf16.mxu1 %v2061_v0 }
  0xe0   :  { %1584 = vmatpush3.bf16.msra.mxu0 %v1750_v38  ;;  %1604 = vmatpush3.bf16.msra.mxu1 %v1750_v38 }
  0xe1   :  { %1585 = vmatprep.subr.bf16.mxu0 %v2061_v0  ;;  %1605 = vmatprep.subr.bf16.mxu1 %v2061_v0 }
  0xe4   :  { %1586 = vmatpush3.bf16.msra.mxu0 %v1751_v39  ;;  %1606 = vmatpush3.bf16.msra.mxu1 %v1751_v39 }
  0xe5   :  { %1587 = vmatprep.subr.bf16.mxu0 %v2061_v0  ;;  %1607 = vmatprep.subr.bf16.mxu1 %v2061_v0 }
  0xe8   :  { %1588 = vmatpush3.bf16.msra.mxu0 %v1752_v40  ;;  %1608 = vmatpush3.bf16.msra.mxu1 %v1752_v40 }
  0xe9   :  { %1589 = vmatprep.subr.bf16.mxu0 %v2061_v0  ;;  %1609 = vmatprep.subr.bf16.mxu1 %v2061_v0 }
  0xec   :  { %1590 = vmatpush3.bf16.msra.mxu0 %v1753_v41  ;;  %1610 = vmatpush3.bf16.msra.mxu1 %v1753_v41 }
  0xed   :  { %1615 = vmatprep.subr.bf16.mxu0 %v2061_v0  ;;  %1635 = vmatprep.subr.bf16.mxu1 %v2061_v0 }
 0x144   :  { %v574_v42 = vpop.xlane.xlu0 %573 }
 0x145   :  { %v575_v45 = vmax.f32 %v574_v42, 1e-24 }
 0x147   :  { %1786 = vrsqrt.f32 %v575_v45 }
 0x151   :  { %v1787_v5 = vpop.eup %1786 }
 0x152   :  { %v578_v8 = vrot.slane %v1787_v5, 1  ;;  %v581_v16 = vmul.f32 %v1787_v5, %v2311_v11  ;;  %v1766_v11 = vld [vmem:[%s2573_s6 + $0x30] sm:$0xff]   ;;  %v1436_v5 = vld [vmem:[#allocation13] ss:$0 sm:$0xff] }
 0x154   :  { %v582_v13 = vmul.f32 %v578_v8, %v2313_v12  ;;  %v1764_v12 = vld [vmem:[%s2573_s6 + $0x28] sm:$0xff]   ;;  %v583_v19 = vpack.c.bf16 %v581_v16, %v581_v16 }
 0x156   :  { %v584_v17 = vpack.c.bf16 %v582_v13, %v582_v13  ;;  %v608_v22 = vunpack.c.l.b16 %v583_v19 }
 0x158   :  { %v609_v20 = vunpack.c.l.b16 %v584_v17 }
 0x15a   :  { %v610_v23 = vrot.slane %v609_v20, 7 }
 0x15c   :  { %v611_v26 = vsel %vm568_vm1, %v610_v23, %v608_v22 }
 0x15d   :  { %v612_v28 = vpack.c.b16 %v611_v26, %v611_v26  ;;  %v1783_v26 = vld [vmem:[#allocation14 + $0x28] sm:$0xff]  }
 0x1a2   :  { %v274_v46 = vpop.f32.mrb[0].mxu0  ;;  %v387_v49 = vpop.f32.mrb[0].mxu1 }
 0x1a3   :  { %v275_v47 = vadd.f32 %v1353_v43, %v274_v46  ;;  %v1553_v48 = vpop.f32.mrb[1].mxu0  ;;  %v388_v51 = vadd.f32 %v1378_v44, %v387_v49  ;;  %v1573_v52 = vpop.f32.mrb[1].mxu1 }
 0x1a4   :  { %v277_v50 = vpop.f32.mrb[2].mxu0  ;;  %v390_v56 = vpop.f32.mrb[2].mxu1 }
 0x1a5   :  { %v281_v53 = vmax.f32 %v275_v47, 0.0  ;;  %v278_v54 = vadd.f32 %v1353_v43, %v277_v50  ;;  %v1554_v55 = vpop.f32.mrb[3].mxu0  ;;  %v394_v57 = vmax.f32 %v388_v51, 0.0  ;;  %v391_v58 = vadd.f32 %v1378_v44, %v390_v56  ;;  %v1574_v59 = vpop.f32.mrb[3].mxu1 }
 0x1a6   :  { %v1421_v55 = vld [vmem:[#allocation8 + $0x1] ss:$0 sm:$0xff] }
 0x1a7   :  { %396 = vst [vmem:[%s2583_s16] sm:$0xff] %v281_v53  ;;  %v282_v60 = vmax.f32 %v278_v54, 0.0  ;;  %398 = vst [vmem:[%s2583_s16 + $0x8] sm:$0xff] %v394_v57  ;;  %v395_v61 = vmax.f32 %v391_v58, 0.0  ;;  %v1396_v54 = vld [vmem:[#allocation8] ss:$0 sm:$0xff] }
 0x1a9   :  { %397 = vst [vmem:[%s2583_s16 + $0x10] sm:$0xff] %v282_v60  ;;  %v417_v63 = vpack.c.bf16 %v282_v60, %v281_v53  ;;  %399 = vst [vmem:[%s2583_s16 + $0x18] sm:$0xff] %v395_v61  ;;  %v515_v2 = vpack.c.bf16 %v395_v61, %v394_v57 }
 0x1ab   :  { %1592 = vmatmul.mubr.bf16.vlgmr.msra.gmra.mrb[4].mxu0 %v417_v63  ;;  %1612 = vmatmul.mubr.bf16.vlgmr.msra.gmra.mrb[4].mxu1 %v515_v2 }
 0x1ac   :  { %1616 = vmatpush3.bf16.msra.mxu0 %v1754_v62  ;;  %1636 = vmatpush3.bf16.msra.mxu1 %v1755_v1 }
 0x1ad   :  { %1617 = vmatprep.subr.bf16.mxu0 %v2061_v0  ;;  %1637 = vmatprep.subr.bf16.mxu1 %v2061_v0 }
 0x1ae   :  { %1631 = vmatprep.mubr.msk.bf16.mxu0 %vm2062_vm0, %v2061_v0  ;;  %1651 = vmatprep.mubr.msk.bf16.mxu1 %vm2062_vm0, %v2061_v0 }
 0x1b0   :  { %1618 = vmatpush3.bf16.msra.mxu0 %v1756_v3  ;;  %1638 = vmatpush3.bf16.msra.mxu1 %v1757_v4 }
 0x1b1   :  { %1619 = vmatprep.subr.bf16.mxu0 %v2061_v0  ;;  %1639 = vmatprep.subr.bf16.mxu1 %v2061_v0 }
 0x1b4   :  { %1620 = vmatpush3.bf16.msra.mxu0 %v1758_v6  ;;  %1640 = vmatpush3.bf16.msra.mxu1 %v1759_v7  ;;  %v1430_v6 = vld [vmem:[#allocation10] ss:$0 sm:$0xff] }
 0x1b5   :  { %1621 = vmatprep.subr.bf16.mxu0 %v2061_v0  ;;  %1641 = vmatprep.subr.bf16.mxu1 %v2061_v0 }
 0x1b8   :  { %1622 = vmatpush3.bf16.msra.mxu0 %v1760_v9  ;;  %1642 = vmatpush3.bf16.msra.mxu1 %v1761_v10 }
 0x1b9   :  { %1623 = vmatprep.subr.bf16.mxu0 %v2061_v0  ;;  %1643 = vmatprep.subr.bf16.mxu1 %v2061_v0 }
 0x1bc   :  { %1624 = vmatpush3.bf16.msra.mxu0 %v1762_v14  ;;  %1644 = vmatpush3.bf16.msra.mxu1 %v1763_v15 }
 0x1bd   :  { %1625 = vmatprep.subr.bf16.mxu0 %v2061_v0  ;;  %1645 = vmatprep.subr.bf16.mxu1 %v2061_v0 }
 0x1c0   :  { %1626 = vmatpush3.bf16.msra.mxu0 %v1764_v12  ;;  %1646 = vmatpush3.bf16.msra.mxu1 %v1765_v18 }
 0x1c1   :  { %1627 = vmatprep.subr.bf16.mxu0 %v2061_v0  ;;  %1647 = vmatprep.subr.bf16.mxu1 %v2061_v0 }
 0x1c4   :  { %1628 = vmatpush3.bf16.msra.mxu0 %v1766_v11  ;;  %1648 = vmatpush3.bf16.msra.mxu1 %v1767_v21 }
 0x1c5   :  { %1629 = vmatprep.subr.bf16.mxu0 %v2061_v0  ;;  %1649 = vmatprep.subr.bf16.mxu1 %v2061_v0 }
 0x1c8   :  { %1630 = vmatpush3.bf16.msra.mxu0 %v1768_v24  ;;  %1650 = vmatpush3.bf16.msra.mxu1 %v1769_v25  ;;  %v1782_v25 = vld [vmem:[#allocation14 + $0x20] sm:$0xff]  }
 0x1c9   :  { %1655 = vmatprep.subr.bf16.mxu0 %v2061_v0  ;;  %1667 = vmatprep.subr.bf16.mxu1 %v2061_v0 }
 0x1cb   :  { %1632 = vmatmul.mubr.bf16.vlgmr.msra.gmra.mrb[8].mxu0 %v612_v28  ;;  %1652 = vmatmul.mubr.bf16.vlgmr.msra.gmra.mrb[8].mxu1 %v732_v27  ;;  %v1784_v27 = vld [vmem:[#allocation14 + $0x30] sm:$0xff]  }
 0x1cc   :  { %1663 = vmatprep.mubr.msk.bf16.mxu0 %vm2062_vm0, %v2061_v0  ;;  %1675 = vmatprep.mubr.msk.bf16.mxu1 %vm2062_vm0, %v2061_v0 }
 0x1cd   :  { %1668 = vmatpush3.bf16.msra.mxu1 %v1770_v29  ;;  %1656 = vmatpush3.bf16.msra.mxu0 %v1771_v30 }
 0x1ce   :  { %1669 = vmatprep.subr.bf16.mxu1 %v2061_v0  ;;  %1657 = vmatprep.subr.bf16.mxu0 %v2061_v0 }
 0x1d1   :  { %1670 = vmatpush3.bf16.msra.mxu1 %v1772_v31  ;;  %1658 = vmatpush3.bf16.msra.mxu0 %v1773_v32  ;;  %v1778_v31 = vld [vmem:[#allocation14] sm:$0xff]  }
 0x1d2   :  { %1671 = vmatprep.subr.bf16.mxu1 %v2061_v0  ;;  %1659 = vmatprep.subr.bf16.mxu0 %v2061_v0 }
 0x1d5   :  { %1672 = vmatpush3.bf16.msra.mxu1 %v1774_v33  ;;  %1660 = vmatpush3.bf16.msra.mxu0 %v1775_v34  ;;  %v1779_v33 = vld [vmem:[#allocation14 + $0x8] sm:$0xff]   ;;  %v1780_v34 = vld [vmem:[#allocation14 + $0x10] sm:$0xff]  }
 0x1d6   :  { %1673 = vmatprep.subr.bf16.mxu1 %v2061_v0  ;;  %1661 = vmatprep.subr.bf16.mxu0 %v2061_v0 }
 0x1d9   :  { %1674 = vmatpush3.bf16.msra.mxu1 %v1776_v35  ;;  %1662 = vmatpush3.bf16.msra.mxu0 %v1777_v36  ;;  %v1781_v35 = vld [vmem:[#allocation14 + $0x18] sm:$0xff]  }
 0x1da   :  { %1679 = vmatprep.subr.mxu0 %v2061_v0  ;;  %1684 = vmatprep.subr.mxu1 %v2061_v0  ;;  %v1785_v36 = vld [vmem:[#allocation14 + $0x38] sm:$0xff]  }
 0x27e   :  { %v506_v38 = vpop.f32.mrb[4].mxu0  ;;  %v550_v41 = vpop.f32.mrb[4].mxu1 }
 0x27f   :  { %v507_v39 = vadd.f32 %v1387_v37, %v506_v38  ;;  %v1593_v40 = vpop.f32.mrb[5].mxu0  ;;  %v551_v43 = vadd.f32 %v1387_v37, %v550_v41  ;;  %v1613_v44 = vpop.f32.mrb[5].mxu1 }
 0x280   :  { %v509_v42 = vpop.f32.mrb[6].mxu0  ;;  %v553_v48 = vpop.f32.mrb[6].mxu1 }
 0x281   :  { %v513_v45 = vmax.f32 %v507_v39, 0.0  ;;  %v510_v46 = vadd.f32 %v1387_v37, %v509_v42  ;;  %v1594_v47 = vpop.f32.mrb[7].mxu0  ;;  %v557_v49 = vmax.f32 %v551_v43, 0.0  ;;  %v554_v50 = vadd.f32 %v1387_v37, %v553_v48  ;;  %v1614_v51 = vpop.f32.mrb[7].mxu1 }
 0x283   :  { %559 = vst [vmem:[#allocation17] sm:$0xff] %v513_v45  ;;  %v514_v52 = vmax.f32 %v510_v46, 0.0  ;;  %561 = vst [vmem:[#allocation17 + $0x8] sm:$0xff] %v557_v49  ;;  %v558_v53 = vmax.f32 %v554_v50, 0.0 }
 0x285   :  { %560 = vst [vmem:[#allocation17 + $0x10] sm:$0xff] %v514_v52  ;;  %562 = vst [vmem:[#allocation17 + $0x18] sm:$0xff] %v558_v53 }
 0x29e   :  { %v696_v56 = vpop.f32.mrb[8].mxu0  ;;  %v816_v59 = vpop.f32.mrb[8].mxu1 }
 0x29f   :  { %v697_v57 = vadd.f32 %v1396_v54, %v696_v56  ;;  %v1633_v58 = vpop.f32.mrb[9].mxu0  ;;  %v817_v61 = vadd.f32 %v1421_v55, %v816_v59  ;;  %v1653_v62 = vpop.f32.mrb[9].mxu1 }
 0x2a0   :  { %v699_v60 = vpop.f32.mrb[10].mxu0  ;;  %v819_v2 = vpop.f32.mrb[10].mxu1 }
 0x2a1   :  { %v906_v63 = vpack.c.bf16 %v697_v57, %v697_v57  ;;  %v1634_v1 = vpop.f32.mrb[11].mxu0  ;;  %v2512_v3 = vpack.c.bf16 %v817_v61, %v817_v61  ;;  %v1654_v4 = vpop.f32.mrb[11].mxu1 }
 0x2a3   :  { %1676 = vmatmul.mubr.msk.bf16.vlgmr.msra.gmra.mrb[12].mxu1 %vm862_vm3, %v906_v63  ;;  %1664 = vmatmul.mubr.msk.bf16.vlgmr.msra.gmra.mrb[12].mxu0 %vm862_vm3, %v2512_v3 }
 0x2a4   :  { %1686 = vmatprep.mubr.msk.f32.mxu1 %vm2062_vm0, %v2061_v0  ;;  %1681 = vmatprep.mubr.msk.f32.mxu0 %vm2062_vm0, %v2061_v0 }
 0x376   :  { %v983_v7 = vpop.f32.mrb[12].mxu1  ;;  %v900_v10 = vpop.f32.mrb[12].mxu0 }
 0x377   :  { %v984_v8 = vadd.f32 %v1436_v5, %v983_v7  ;;  %v1677_v9 = vpop.f32.mrb[13].mxu1  ;;  %v901_v14 = vadd.f32 %v1430_v6, %v900_v10  ;;  %v1665_v15 = vpop.f32.mrb[13].mxu0 }
 0x378   :  { %v986_v13 = vpop.f32.mrb[14].mxu1  ;;  %v903_v17 = vpop.f32.mrb[14].mxu0 }
 0x379   :  { %v1678_v16 = vpop.f32.mrb[15].mxu1  ;;  %1680 = vmatpush3.xpose.msk.msra.mxu0 %vm862_vm3, %v984_v8  ;;  %v1666_v12 = vpop.f32.mrb[15].mxu0 }
 0x37a   :  { %1689 = vmatprep.subr.bf16.mxu0 %v2061_v0 }
 0x37c   :  { %1682 = vmatmul.mubr.msk.f32.vlgmr.msra.gmra.mrb[16].mxu0 %vm862_vm3, %v901_v14 }
 0x37d   :  { %1697 = vmatprep.mubr.msk.bf16.mxu0 %vm2062_vm0, %v2061_v0  ;;  %1690 = vmatpush3.bf16.msra.mxu0 %v1782_v25 }
 0x37e   :  { %1691 = vmatprep.subr.bf16.mxu0 %v2061_v0 }
 0x381   :  { %1692 = vmatpush3.bf16.msra.mxu0 %v1783_v26 }
 0x382   :  { %1693 = vmatprep.subr.bf16.mxu0 %v2061_v0 }
 0x385   :  { %1694 = vmatpush3.bf16.msra.mxu0 %v1784_v27 }
 0x386   :  { %1695 = vmatprep.subr.bf16.mxu0 %v2061_v0 }
 0x389   :  { %1696 = vmatpush3.bf16.msra.mxu0 %v1785_v36 }
 0x44f   :  { %v1061_v18 = vpop.f32.mrb[16].mxu0 }
 0x450   :  { %v1066_v19 = vsel %vm1065_vm4, %v1061_v18, -inf  ;;  %v1683_v20 = vpop.f32.mrb[17].mxu0 }
 0x451   :  { %1067 = vmax.xlane.f32.xlu0 %v1066_v19 }
 0x4de   :  { %v1068_v11 = vpop.xlane.xlu0 %1067 }
 0x4df   :  { %v1069_v21 = vsub.f32 %v1061_v18, %v1068_v11 }
 0x4e1   :  { %v1070_v22 = vmul.f32 1.442695, %v1069_v21 }
 0x4e3   :  { %1788 = vpow2.f32 %v1070_v22 }
 0x4ed   :  { %v1789_v23 = vpop.eup %1788 }
 0x4ee   :  { %v1072_v24 = vsel %vm1065_vm4, %v1789_v23, 0.0 }
 0x4ef   :  { %1073 = vadd.xlane.f32.xlu1 %v1072_v24 }
 0x500   :  { %1077 = vrot.lane.b32.xlu1 %v984_v8, %s2053_s7  ;;  %s1319_s7 = sshll.u32 %s2063_s8, 4  ;;  %s1320_s7 = int_to_ptr.vmem [resolvable:$true] %s1319_s7 }
 0x501   :  { %s1990_s5 = scalar_lea.vmem %s1320_s7, 512  ;;  %p1995_p3 = scmp.lt.s32.totalorder %s1320_s7, %s1320_s7 }
 0x502   :  { %p1991_p2 = scmp.ne.s32.totalorder %s1320_s7, %s1990_s5  ;;  %p1996_p4 = scmp.lt.s32.totalorder %s1990_s5, %s1990_s5 }
 0x504   :  { %p1997_p5 = por %p1996_p4, %p1995_p3 }
 0x506   :  { %p1998_p6 = pnand %p1997_p5, %p1991_p2 }
 0x57c   :  { %v1074_v28 = vpop.xlane.xlu1 %1073 }
 0x57d   :  { %1790 = vrcp.f32 %v1074_v28 }
 0x580   :  { %v1078_v29 = vpop.permute.xlu1 %1077 }
 0x581   :  { %1685 = vmatpush3.msk.msra.mxu1 %vm571_vm2, %v1078_v29 }
 0x582   :  { %1701 = vmatprep.subr.bf16.mxu1 %v2061_v0 }
 0x587   :  { %v1791_v30 = vpop.eup %1790 }
 0x588   :  { %v1076_v32 = vmul.f32 %v1791_v30, %v1789_v23 }
 0x58a   :  { %1687 = vmatmul.mubr.msk.f32.vlgmr.msra.gmra.mrb[16].mxu1 %vm1079_vm5, %v1076_v32 }
 0x58b   :  { %1702 = vmatpush3.bf16.msra.mxu1 %v1778_v31  ;;  %1709 = vmatprep.mubr.msk.bf16.mxu1 %vm2062_vm0, %v2061_v0 }
 0x58c   :  { %1703 = vmatprep.subr.bf16.mxu1 %v2061_v0 }
 0x58f   :  { %1704 = vmatpush3.bf16.msra.mxu1 %v1779_v33 }
 0x590   :  { %1705 = vmatprep.subr.bf16.mxu1 %v2061_v0 }
 0x593   :  { %1706 = vmatpush3.bf16.msra.mxu1 %v1780_v34 }
 0x594   :  { %1707 = vmatprep.subr.bf16.mxu1 %v2061_v0 }
 0x597   :  { %1708 = vmatpush3.bf16.msra.mxu1 %v1781_v35 }
 0x59a   :  { %1710 = vmatmul.mubr.msk.bf16.vlgmr.msra.gmra.mrb[20].mxu1 %vm862_vm3, %v2512_v3 }
 0x65d   :  { %v1151_v37 = vpop.f32.mrb[16].mxu1 }
 0x65e   :  { %v1163_v38 = vpack.c.bf16 %v1151_v37, %v1151_v37  ;;  %v1688_v39 = vpop.f32.mrb[17].mxu1 }
 0x660   :  { %1698 = vmatmul.mubr.msk.bf16.vlgmr.msra.gmra.mrb[20].mxu0 %vm862_vm3, %v1163_v38 }
 0x66d   :  { %v1298_v40 = vpop.f32.mrb[20].mxu1 }
 0x66e   :  { %v1711_v41 = vpop.f32.mrb[21].mxu1 }
 0x66f   :  { %v1301_v42 = vpop.f32.mrb[22].mxu1 }
 0x670   :  { %v1712_v43 = vpop.f32.mrb[23].mxu1 }
 0x671   :  { %2001 = shalt.err (!%p1998_p6)
}
 0x672   :  { %s2002_s3 = scalar_lea.hbm %s2581_s14, 512 }
 0x673   :  { %p2003_p7 = scmp.ne.s32.totalorder %s2581_s14, %s2002_s3  ;;  %p2006_p8 = scmp.lt.u32.totalorder %s2002_s3, %s2581_s14 }
 0x675   :  { %p2008_p9 = pnand %p2006_p8, %p2003_p7 }
 0x677   :  { %2011 = shalt.err (!%p2008_p9)
}
 0x678   :  { %1325 = dma.vmem_to_hbm [thread:$0]  %s1320_s7, 512, %s2581_s14, [#allocation4], %s2589_s12, %s2589_s12, %s2051_s19   ;;  %v1456_v44 = vld [vmem:[#allocation16] ss:$0 sm:$0xff] }
 0x679   :  { %s2064_s20 = smov [#allocation18]  }
 0x67a   :  { %s1332_s11 = sshll.u32 %s2064_s20, 4  ;;  %s1333_s11 = int_to_ptr.vmem [resolvable:$true] %s1332_s11 }
 0x67b   :  { %s2012_s23 = scalar_lea.vmem %s1333_s11, 32  ;;  %p2017_p11 = scmp.lt.s32.totalorder %s1333_s11, %s1333_s11 }
 0x67c   :  { %p2013_p10 = scmp.ne.s32.totalorder %s1333_s11, %s2012_s23  ;;  %p2018_p12 = scmp.lt.s32.totalorder %s2012_s23, %s2012_s23 }
 0x67e   :  { %p2019_p13 = por %p2018_p12, %p2017_p11 }
 0x680   :  { %p2020_p0 = pnand %p2019_p13, %p2013_p10 }
 0x733   :  { %v1234_v0 = vpop.f32.mrb[20].mxu0 }
 0x734   :  { %v1299_v45 = vadd.f32 %v1298_v40, %v1234_v0  ;;  %v1699_v46 = vpop.f32.mrb[21].mxu0 }
 0x735   :  { %v1237_v47 = vpop.f32.mrb[22].mxu0 }
 0x736   :  { %v1311_v48 = vadd.f32 %v1456_v44, %v1299_v45  ;;  %v1700_v49 = vpop.f32.mrb[23].mxu0 }
 0x738   :  { %v1312_v50 = vmax.f32 %v1311_v48, 0.0 }
 0x73a   :  { %1313 = vst [vmem:[#allocation18] sm:$0x3] %v1312_v50 }
 0x73b   :  { %2023 = shalt.err (!%p2020_p0)
}
 0x73c   :  { %s2024_s12 = scalar_lea.hbm %s2582_s15, 32 }
 0x73d   :  { %p2025_p1 = scmp.ne.s32.totalorder %s2582_s15, %s2024_s12  ;;  %p2028_p2 = scmp.lt.u32.totalorder %s2024_s12, %s2582_s15 }
 0x73f   :  { %p2030_p3 = pnand %p2028_p2, %p2025_p1 }
 0x741   :  { %2033 = shalt.err (!%p2030_p3)
}
 0x742   :  { %1335 = dma.vmem_to_hbm [thread:$0]  %s1333_s11, 32, %s2582_s15, [#allocation19]  }
 0x743   :  { %2044 = dma.done.wait [#allocation4], 512  }
 0x744   :  { %2045 = vsyncadd [#allocation4], 4294966784 }
 0x745   :  { %2046 = dma.done.wait [#allocation19], 32  }
 0x746   :  { %2047 = vsyncadd [#allocation19], 4294967264 }
 0x747   :  { %1346 = vsyncpa [#allocation3], 1 }
 0x748   :  { %1347 = vsyncpa [#allocation6], 1 }
 0x749   :  { %1348 = vsyncpa [#allocation9], 1 }
 0x74a   :  { %1349 = vsyncpa [#allocation12], 1 }
 0x74b   :  { %1350 = vsyncpa [#allocation15], 1 }
 0x74c   :  { %1351 = vsyncpa [#allocation4], 1 }
 0x74d   :  { %1352 = vsyncpa [#allocation19], 1 }

</bundles_post_ra>
